<compile_context>
chip_gen: v7x
topology: tpu7x:2x2x1
jax: 0.10.0
libtpu: 0.0.40
codegen_flags: <defaults>
</compile_context>

<pallas_src>
import functools

import jax
import jax.numpy as jnp
from jax import lax
from jax.experimental import pallas as pl
from jax.experimental.pallas import tpu as pltpu

_MiB = 1024 * 1024


# ---------------------------------------------------------------------------
# Generation-aware VMEM budgeting.
# ---------------------------------------------------------------------------
def _vmem_capacity_bytes():
    try:
        return int(pltpu.get_tpu_info().vmem_capacity_bytes)
    except Exception:
        return 64 * _MiB  # conservative fallback (v7x per-TensorCore size)


def _budgets():
    """(query-tile budget, batch-fold budget, physical capacity) in bytes."""
    cap = _vmem_capacity_bytes()
    if cap >= 96 * _MiB:          # v5e / v6e: 128 MiB VMEM
        return 56 * _MiB, 24 * _MiB, cap
    else:                         # v7x: 64 MiB per TensorCore
        return 26 * _MiB, 16 * _MiB, cap


def _q_tile_footprint(tq, Lk, D, Dv, mask_bytes_per_elem):
    """Approx. VMEM bytes for one grid step (double-buffered I/O + body temps)."""
    io = 4 * (tq * D + Lk * D + Lk * Dv + tq * Dv + tq * Lk) \
        + mask_bytes_per_elem * tq * Lk
    body = 2 * 4 * tq * Lk           # scores + exp intermediates (f32)
    return 2 * io + body             # x2: double buffering of the DMA'd blocks


def _pick_tile_q(Lq, Lk, D, Dv, budget, mask_bytes_per_elem):
    """Largest MXU/lane-friendly query tile whose footprint fits the budget."""
    if Lq <= 512 or _q_tile_footprint(Lq, Lk, D, Dv, mask_bytes_per_elem) <= budget:
        return Lq
    # Prefer multiples of 128 (MXU passes, unmasked lane-dense stores).
    for tq in (1024, 512, 384, 256, 128, 64, 32, 16, 8):
        if Lq % tq == 0 and _q_tile_footprint(tq, Lk, D, Dv, mask_bytes_per_elem) <= budget:
            return tq
    # Nothing fits (Lk-dominated working set): take the smallest divisor and
    # let the caller raise vmem_limit_bytes to cover it.
    # TODO(synk): tile Lk with online-softmax accumulators + deferred W
    # normalization so very long key lengths fit VMEM on v7x.
    for tq in (8, 16, 32, 64, 128):
        if Lq % tq == 0:
            return tq
    return Lq


def _pick_tile_b(B, Lq, Lk, D, Dv, budget, mask_bytes_per_elem):
    """Fold several batch elements into one grid step when shapes are tiny."""
    per = 4 * (Lq * D + Lk * D + Lk * Dv + Lq * Dv + Lq * Lk) \
        + mask_bytes_per_elem * Lq * Lk + 2 * 4 * Lq * Lk
    for tb in range(B, 0, -1):
        if B % tb == 0 and 2 * tb * per <= budget:
            return tb
    return 1


def _vmem_limit_for(footprint_bytes, cap):
    """Explicit scoped-VMEM limit: footprint + 25% headroom, floor 32 MiB, cap ~90%."""
    want = max(32 * _MiB, int(footprint_bytes * 1.25))
    return int(min(cap - cap // 10, want))


# ---------------------------------------------------------------------------
# Numerics helpers.
# ---------------------------------------------------------------------------
def _softmax_last_axis(scores):
    """Numerically-stable softmax over the last axis (EUP reciprocal + Newton)."""
    smax = jnp.max(scores, axis=-1, keepdims=True)
    e = jnp.exp(scores - smax)
    denom = jnp.sum(e, axis=-1, keepdims=True)
    inv = pl.reciprocal(denom, approx=True)      # EUP vrcp (own VLIW slot)
    inv = inv * (2.0 - denom * inv)              # one Newton step -> f32 accuracy
    return e * inv


# ---------------------------------------------------------------------------
# Kernel 1: dense-mask path (faithful to the PyTorch module's signature).
# Blocks keep a (possibly folded) batch dim: shapes are [TB, TQ/Lk, ...].
# ---------------------------------------------------------------------------
def _attn_masked_kernel(q_ref, k_ref, v_ref, m_ref, r_ref, w_ref, *,
                        scale, use_bf16):
    # Fold the 1/sqrt(D) scale into Q: TQ*D multiplies instead of TQ*Lk.
    q = q_ref[...].astype(jnp.float32) * scale   # [TB, TQ, D]
    k = k_ref[...].astype(jnp.float32)           # [TB, Lk, D]
    v = v_ref[...].astype(jnp.float32)           # [TB, Lk, Dv]
    mask = m_ref[...]                            # [TB, TQ, Lk]
    if mask.dtype != jnp.bool_:
        mask = mask != 0

    if use_bf16:
        qk_lhs, qk_rhs = q.astype(jnp.bfloat16), k.astype(jnp.bfloat16)
    else:
        qk_lhs, qk_rhs = q, k
    # Q @ K^T: contract on the last dims directly (no k.T transpose).
    scores = jnp.einsum("bqd,bkd->bqk", qk_lhs, qk_rhs,
                        preferred_element_type=jnp.float32)
    scores = jnp.where(mask, jnp.float32(-1000.0), scores)

    attn = _softmax_last_axis(scores)            # [TB, TQ, Lk]
    w_ref[...] = attn.astype(w_ref.dtype)

    if use_bf16:
        pv_lhs, pv_rhs = attn.astype(jnp.bfloat16), v.astype(jnp.bfloat16)
    else:
        pv_lhs, pv_rhs = attn, v
    r_ref[...] = jnp.einsum("bqk,bkv->bqv", pv_lhs, pv_rhs,
                            preferred_element_type=jnp.float32).astype(r_ref.dtype)


def attn_masked(Q, K, V, key_length_mask, *, use_bf16_matmul=False):
    """Pallas AttnMasked.forward with an explicit dense boolean mask.

    Q: [B, Lq, D], K: [B, Lk, D], V: [B, Lk, Dv],
    key_length_mask: [B, Lq, Lk] (True / nonzero = masked).
    Returns (R [B, Lq, Dv], attn_weights [B, Lq, Lk]).
    """
    B, Lq, D = Q.shape
    _, Lk, _ = K.shape
    Dv = V.shape[2]
    scale = 1.0 / float(D) ** 0.5

    # Pass the mask through untouched (bool is already 1 byte in XLA); the
    # kernel compares against zero only for non-bool dtypes.
    mask = key_length_mask
    mask_bpe = max(1, mask.dtype.itemsize)

    q_budget, fold_budget, cap = _budgets()

    TB = _pick_tile_b(B, Lq, Lk, D, Dv, fold_budget, mask_bpe)
    TQ = Lq if TB > 1 else _pick_tile_q(Lq, Lk, D, Dv, q_budget, mask_bpe)

    # v7x has 2 TensorCores: if folding collapsed the grid to a single step and
    # the step is genuinely compute-bound, split one parallel axis back in two.
    step_flops = 2 * TB * TQ * Lk * (D + Dv)
    if (B // TB) * (Lq // TQ) == 1 and step_flops >= (1 << 28):
        if TB % 2 == 0:
            TB //= 2
        elif TQ % 2 == 0 and (TQ // 2) % 8 == 0:
            TQ //= 2

    footprint = TB * _q_tile_footprint(TQ, Lk, D, Dv, mask_bpe)
    vmem_limit = _vmem_limit_for(footprint, cap)

    kernel = functools.partial(_attn_masked_kernel, scale=scale,
                               use_bf16=use_bf16_matmul)

    grid_spec = pltpu.PrefetchScalarGridSpec(
        num_scalar_prefetch=0,
        grid=(B // TB, Lq // TQ),
        in_specs=[
            pl.BlockSpec((TB, TQ, D), lambda b, q: (b, q, 0)),    # Q
            pl.BlockSpec((TB, Lk, D), lambda b, q: (b, 0, 0)),    # K
            pl.BlockSpec((TB, Lk, Dv), lambda b, q: (b, 0, 0)),   # V
            pl.BlockSpec((TB, TQ, Lk), lambda b, q: (b, q, 0)),   # mask
        ],
        out_specs=[
            pl.BlockSpec((TB, TQ, Dv), lambda b, q: (b, q, 0)),   # R
            pl.BlockSpec((TB, TQ, Lk), lambda b, q: (b, q, 0)),   # attn weights
        ],
    )

    cost = pl.CostEstimate(
        flops=2 * B * Lq * Lk * (D + Dv),
        transcendentals=B * Lq * Lk,
        bytes_accessed=4 * (B * Lq * D + B * Lk * D + B * Lk * Dv
                            + B * Lq * Dv + B * Lq * Lk)
        + mask_bpe * B * Lq * Lk,
    )

    R, W = pl.pallas_call(
        kernel,
        grid_spec=grid_spec,
        out_shape=(
            jax.ShapeDtypeStruct((B, Lq, Dv), jnp.float32),
            jax.ShapeDtypeStruct((B, Lq, Lk), jnp.float32),
        ),
        compiler_params=pltpu.CompilerParams(
            dimension_semantics=("parallel", "parallel"),
            vmem_limit_bytes=vmem_limit),
        cost_estimate=cost,
    )(Q, K, V, mask)
    return R, W


# ---------------------------------------------------------------------------
# Kernel 2: key-length fast path — no dense mask in HBM at all.
# key_lengths [B] is scalar-prefetched into SMEM; the mask is rebuilt with a
# broadcasted iota in-kernel.  Batch dim is squeezed; refs are 2-D.
# ---------------------------------------------------------------------------
def _attn_masked_len_kernel(len_ref, q_ref, k_ref, v_ref, r_ref, w_ref, *,
                            scale, use_bf16):
    b = pl.program_id(0)
    klen = len_ref[b]                                    # SMEM scalar read

    q = q_ref[...].astype(jnp.float32) * scale           # [TQ, D]  (scale folded)
    k = k_ref[...].astype(jnp.float32)                   # [Lk, D]
    v = v_ref[...].astype(jnp.float32)                   # [Lk, Dv]

    # Rebuild the length mask in-kernel: key position >= length  => masked.
    key_pos = lax.broadcasted_iota(jnp.int32, (q.shape[0], k.shape[0]), 1)
    mask = key_pos >= klen                               # [TQ, Lk]

    if use_bf16:
        qk_lhs, qk_rhs = q.astype(jnp.bfloat16), k.astype(jnp.bfloat16)
    else:
        qk_lhs, qk_rhs = q, k
    # Transpose-free QK^T (contract on the last dim of both operands).
    scores = lax.dot_general(qk_lhs, qk_rhs, (((1,), (1,)), ((), ())),
                             preferred_element_type=jnp.float32)
    scores = jnp.where(mask, jnp.float32(-1000.0), scores)

    attn = _softmax_last_axis(scores)                    # [TQ, Lk]
    w_ref[...] = attn.astype(w_ref.dtype)

    if use_bf16:
        pv_lhs, pv_rhs = attn.astype(jnp.bfloat16), v.astype(jnp.bfloat16)
    else:
        pv_lhs, pv_rhs = attn, v
    r_ref[...] = jnp.dot(pv_lhs, pv_rhs,
                         preferred_element_type=jnp.float32).astype(r_ref.dtype)


def attn_masked_from_lengths(Q, K, V, key_lengths, *, use_bf16_matmul=False):
    """Fast path: mask defined by per-batch valid key lengths (no dense mask)."""
    B, Lq, D = Q.shape
    _, Lk, _ = K.shape
    Dv = V.shape[2]
    scale = 1.0 / float(D) ** 0.5

    q_budget, _, cap = _budgets()
    TQ = _pick_tile_q(Lq, Lk, D, Dv, q_budget, 0)
    footprint = _q_tile_footprint(TQ, Lk, D, Dv, 0)
    vmem_limit = _vmem_limit_for(footprint, cap)

    kernel = functools.partial(_attn_masked_len_kernel, scale=scale,
                               use_bf16=use_bf16_matmul)

    grid_spec = pltpu.PrefetchScalarGridSpec(
        num_scalar_prefetch=1,                            # key_lengths -> SMEM
        grid=(B, Lq // TQ),
        in_specs=[
            pl.BlockSpec((None, TQ, D), lambda b, q, lens: (b, q, 0)),    # Q
            pl.BlockSpec((None, Lk, D), lambda b, q, lens: (b, 0, 0)),    # K
            pl.BlockSpec((None, Lk, Dv), lambda b, q, lens: (b, 0, 0)),   # V
        ],
        out_specs=[
            pl.BlockSpec((None, TQ, Dv), lambda b, q, lens: (b, q, 0)),   # R
            pl.BlockSpec((None, TQ, Lk), lambda b, q, lens: (b, q, 0)),   # attn
        ],
    )

    cost = pl.CostEstimate(
        flops=2 * B * Lq * Lk * (D + Dv),
        transcendentals=B * Lq * Lk,
        bytes_accessed=4 * (B * Lq * D + B * Lk * D + B * Lk * Dv
                            + B * Lq * Dv + B * Lq * Lk + B),
    )

    R, W = pl.pallas_call(
        kernel,
        grid_spec=grid_spec,
        out_shape=(
            jax.ShapeDtypeStruct((B, Lq, Dv), jnp.float32),
            jax.ShapeDtypeStruct((B, Lq, Lk), jnp.float32),
        ),
        compiler_params=pltpu.CompilerParams(
            dimension_semantics=("parallel", "parallel"),
            vmem_limit_bytes=vmem_limit),
        cost_estimate=cost,
    )(key_lengths.astype(jnp.int32), Q, K, V)
    return R, W


# ---------------------------------------------------------------------------
# Pure-JAX reference (mirrors the PyTorch module exactly).
# ---------------------------------------------------------------------------
def _reference(Q, K, V, mask):
    D = Q.shape[2]
    scores = jnp.einsum("bqd,bkd->bqk", Q, K) / jnp.sqrt(jnp.float32(D))
    scores = jnp.where(mask, -1000.0, scores)
    attn = jax.nn.softmax(scores, axis=2)
    R = jnp.einsum("bqk,bkv->bqv", attn, V)
    return R, attn


if __name__ == "__main__":
    key = jax.random.PRNGKey(0)
    B, Lq, Lk, D, Dv = 2, 8, 8, 32, 32

    kq, kk, kv = jax.random.split(key, 3)
    Q = jax.random.normal(kq, (B, Lq, D), dtype=jnp.float32)
    K = jax.random.normal(kk, (B, Lk, D), dtype=jnp.float32)
    V = jax.random.normal(kv, (B, Lk, Dv), dtype=jnp.float32)

    # Per-batch valid key length; True = masked (padding).
    key_lengths = jnp.array([5, 7], dtype=jnp.int32)
    key_pos = jnp.arange(Lk)[None, None, :]                     # [1, 1, Lk]
    key_length_mask = key_pos >= key_lengths[:, None, None]     # [B, 1, Lk]
    key_length_mask = jnp.broadcast_to(key_length_mask, (B, Lq, Lk))

    R_ref, W_ref = _reference(Q, K, V, key_length_mask)

    # Path 1: dense-mask kernel (module-faithful signature, bool mask as-is).
    R1, W1 = attn_masked(Q, K, V, key_length_mask)
    jax.block_until_ready((R1, W1))
    assert jnp.allclose(R1, R_ref, atol=1e-4, rtol=1e-4), "R mismatch (dense mask)"
    assert jnp.allclose(W1, W_ref, atol=1e-5, rtol=1e-4), "attn mismatch (dense mask)"
    assert jnp.allclose(jnp.sum(W1, axis=2), 1.0, atol=1e-5), "softmax not normalized"

    # Path 2: key-length fast path (no dense mask materialized).
    R2, W2 = attn_masked_from_lengths(Q, K, V, key_lengths)
    jax.block_until_ready((R2, W2))
    assert jnp.allclose(R2, R_ref, atol=1e-4, rtol=1e-4), "R mismatch (lengths)"
    assert jnp.allclose(W2, W_ref, atol=1e-5, rtol=1e-4), "attn mismatch (lengths)"
    assert jnp.allclose(jnp.sum(W2, axis=2), 1.0, atol=1e-5), "softmax not normalized"

    print("KERNEL_OK")
</pallas_src>

<mosaic_0001>
module attributes {stable_mosaic.version = 11 : i64} {
  func.func @_attn_masked_kernel(%arg0: i32, %arg1: i32, %arg2: memref<2x8x32xf32, #tpu.memory_space<vmem>>, %arg3: memref<2x8x32xf32, #tpu.memory_space<vmem>>, %arg4: memref<2x8x32xf32, #tpu.memory_space<vmem>>, %arg5: memref<2x8x8xi32, #tpu.memory_space<vmem>>, %arg6: memref<2x8x32xf32, #tpu.memory_space<vmem>>, %arg7: memref<2x8x8xf32, #tpu.memory_space<vmem>>) attributes {dimension_semantics = [#tpu.dimension_semantics<parallel>, #tpu.dimension_semantics<parallel>], iteration_bounds = array<i64: 1, 1>, scalar_prefetch = 0 : i64, scratch_operands = 0 : i64, tpu.core_type = #tpu.core_type<tc>, window_params = [{transform_indices = @transform_0, window_bounds = array<i64: 2, 8, 32>}, {transform_indices = @transform_1, window_bounds = array<i64: 2, 8, 32>}, {transform_indices = @transform_2, window_bounds = array<i64: 2, 8, 32>}, {transform_indices = @transform_3, window_bounds = array<i64: 2, 8, 8>}, {transform_indices = @transform_4, window_bounds = array<i64: 2, 8, 32>}, {transform_indices = @transform_5, window_bounds = array<i64: 2, 8, 8>}]} {
    %c0 = arith.constant 0 : index
    %c0_0 = arith.constant 0 : index
    %c0_1 = arith.constant 0 : index
    %0 = vector.load %arg2[%c0, %c0_0, %c0_1] : memref<2x8x32xf32, #tpu.memory_space<vmem>>, vector<2x8x32xf32>
    %cst = arith.constant 0.176776692 : f32
    %1 = vector.broadcast %cst : f32 to vector<2x8x32xf32>
    %2 = arith.mulf %0, %1 : vector<2x8x32xf32>
    %c0_2 = arith.constant 0 : index
    %c0_3 = arith.constant 0 : index
    %c0_4 = arith.constant 0 : index
    %3 = vector.load %arg3[%c0_2, %c0_3, %c0_4] : memref<2x8x32xf32, #tpu.memory_space<vmem>>, vector<2x8x32xf32>
    %c0_5 = arith.constant 0 : index
    %c0_6 = arith.constant 0 : index
    %c0_7 = arith.constant 0 : index
    %4 = vector.load %arg4[%c0_5, %c0_6, %c0_7] : memref<2x8x32xf32, #tpu.memory_space<vmem>>, vector<2x8x32xf32>
    %c0_8 = arith.constant 0 : index
    %c0_9 = arith.constant 0 : index
    %c0_10 = arith.constant 0 : index
    %5 = vector.load %arg5[%c0_8, %c0_9, %c0_10] : memref<2x8x8xi32, #tpu.memory_space<vmem>>, vector<2x8x8xi32>
    %cst_11 = arith.constant dense<0> : vector<2x8x8xi32>
    %6 = arith.cmpi ne, %5, %cst_11 : vector<2x8x8xi32>
    "tpu.trace_start"() <{level = 10 : i32, message = "bqd,bkd->bqk"}> : () -> ()
    %cst_12 = arith.constant dense<0.000000e+00> : vector<2x8x8xf32>
    %7 = tpu.matmul %2, %3, %cst_12 {dimension_numbers = #tpu.dot_dimension_numbers<[2], [2], [1], [1], [0, 0, 0, 1, 1, 1], [0], [0]>} : vector<2x8x32xf32>, vector<2x8x32xf32>, vector<2x8x8xf32> -> vector<2x8x8xf32>
    %cst_13 = arith.constant -1.000000e+03 : f32
    "tpu.trace_stop"() : () -> ()
    %8 = vector.broadcast %cst_13 : f32 to vector<2x8x8xf32>
    %9 = arith.select %6, %8, %7 : vector<2x8x8xi1>, vector<2x8x8xf32>
    %cst_14 = arith.constant dense<0xFF800000> : vector<2x8xf32>
    %10 = vector.multi_reduction <maximumf>, %9, %cst_14 [2] : vector<2x8x8xf32> to vector<2x8xf32>
    %11 = vector.shape_cast %10 : vector<2x8xf32> to vector<2x8x1xf32>
    %12 = vector.broadcast %11 : vector<2x8x1xf32> to vector<2x8x8xf32>
    %13 = arith.subf %9, %12 : vector<2x8x8xf32>
    %14 = math.exp %13 : vector<2x8x8xf32>
    %cst_15 = arith.constant dense<0.000000e+00> : vector<2x8xf32>
    %15 = vector.multi_reduction <add>, %14, %cst_15 [2] : vector<2x8x8xf32> to vector<2x8xf32>
    %16 = vector.shape_cast %15 : vector<2x8xf32> to vector<2x8x1xf32>
    %17 = tpu.reciprocal %16 {approx = true} : vector<2x8x1xf32> -> vector<2x8x1xf32>
    %18 = arith.mulf %16, %17 : vector<2x8x1xf32>
    %cst_16 = arith.constant 2.000000e+00 : f32
    %19 = vector.broadcast %cst_16 : f32 to vector<2x8x1xf32>
    %20 = arith.subf %19, %18 : vector<2x8x1xf32>
    %21 = arith.mulf %17, %20 : vector<2x8x1xf32>
    %22 = vector.broadcast %21 : vector<2x8x1xf32> to vector<2x8x8xf32>
    %23 = arith.mulf %14, %22 : vector<2x8x8xf32>
    %c0_17 = arith.constant 0 : index
    %c0_18 = arith.constant 0 : index
    %c0_19 = arith.constant 0 : index
    %24 = vector.load %arg7[%c0_17, %c0_18, %c0_19] : memref<2x8x8xf32, #tpu.memory_space<vmem>>, vector<2x8x8xf32>
    tpu.vector_store %arg7[%c0_17, %c0_18, %c0_19], %23 {strides = array<i32>} : memref<2x8x8xf32, #tpu.memory_space<vmem>>, vector<2x8x8xf32>,
    "tpu.trace_start"() <{level = 10 : i32, message = "bqk,bkv->bqv"}> : () -> ()
    %cst_20 = arith.constant dense<0.000000e+00> : vector<2x8x32xf32>
    %25 = tpu.matmul %23, %4, %cst_20 {dimension_numbers = #tpu.dot_dimension_numbers<[2], [1], [1], [2], [0, 0, 0, 1, 1, 2], [0], [0]>} : vector<2x8x8xf32>, vector<2x8x32xf32>, vector<2x8x32xf32> -> vector<2x8x32xf32>
    "tpu.trace_stop"() : () -> ()
    %c0_21 = arith.constant 0 : index
    %c0_22 = arith.constant 0 : index
    %c0_23 = arith.constant 0 : index
    %26 = vector.load %arg6[%c0_21, %c0_22, %c0_23] : memref<2x8x32xf32, #tpu.memory_space<vmem>>, vector<2x8x32xf32>
    tpu.vector_store %arg6[%c0_21, %c0_22, %c0_23], %25 {strides = array<i32>} : memref<2x8x32xf32, #tpu.memory_space<vmem>>, vector<2x8x32xf32>,
    return
  }
  func.func @transform_0(%arg0: i32, %arg1: i32) -> (i32, i32, i32) {
    %c0_i32 = arith.constant 0 : i32
    %c0_i32_0 = arith.constant 0 : i32
    return %arg0, %arg1, %c0_i32 : i32, i32, i32
  }
  func.func @transform_1(%arg0: i32, %arg1: i32) -> (i32, i32, i32) {
    %c0_i32 = arith.constant 0 : i32
    %c0_i32_0 = arith.constant 0 : i32
    %c0_i32_1 = arith.constant 0 : i32
    return %arg0, %c0_i32, %c0_i32_0 : i32, i32, i32
  }
  func.func @transform_2(%arg0: i32, %arg1: i32) -> (i32, i32, i32) {
    %c0_i32 = arith.constant 0 : i32
    %c0_i32_0 = arith.constant 0 : i32
    %c0_i32_1 = arith.constant 0 : i32
    return %arg0, %c0_i32, %c0_i32_0 : i32, i32, i32
  }
  func.func @transform_3(%arg0: i32, %arg1: i32) -> (i32, i32, i32) {
    %c0_i32 = arith.constant 0 : i32
    %c0_i32_0 = arith.constant 0 : i32
    return %arg0, %arg1, %c0_i32 : i32, i32, i32
  }
  func.func @transform_4(%arg0: i32, %arg1: i32) -> (i32, i32, i32) {
    %c0_i32 = arith.constant 0 : i32
    %c0_i32_0 = arith.constant 0 : i32
    return %arg0, %arg1, %c0_i32 : i32, i32, i32
  }
  func.func @transform_5(%arg0: i32, %arg1: i32) -> (i32, i32, i32) {
    %c0_i32 = arith.constant 0 : i32
    %c0_i32_0 = arith.constant 0 : i32
    return %arg0, %arg1, %c0_i32 : i32, i32, i32
  }
}

</mosaic_0001>

<bundles_post_ra>
// kernel: tpu_custom_call.1
= control target key start
LH: loop header
LB: loop body
LE: loop exit
PB: predicated region body
PF: predicated region fallthrough
CT: control target
= control target key end

     0   :  { %11 = vsyncpa [#allocation3], 0  ;;  %s703_s0 = inlined_call_operand.vmem [shape: f32[2,8,32], index: 0, kind: input, shape index: {}]   ;;  %s704_s1 = inlined_call_operand.hbm [shape: f32[2,8,32], index: 1, kind: input, shape index: {}]   ;;  %s705_s2 = inlined_call_operand.hbm [shape: f32[2,8,32], index: 2, kind: input, shape index: {}]   ;;  %s706_s3 = inlined_call_operand.vmem [shape: s32[2,8,8], index: 3, kind: input, shape index: {}]   ;;  %s707_s4 = inlined_call_operand.hbm [shape: f32[2,8,32], index: 4, kind: output, shape index: {0}]   ;;  %s708_s5 = inlined_call_operand.hbm [shape: f32[2,8,8], index: 5, kind: output, shape index: {1}]  }
   0x1   :  { %12 = vsyncpa [#allocation6], 0 }
   0x2   :  { %13 = vsyncpa [#allocation4], 0 }
   0x3   :  { %14 = vsyncpa [#allocation9], 0  ;;  %s575_s18 = smov [#allocation2]   ;;  %s479_s22 = scalar_lea.hbm %s704_s1, 256 }
   0x4   :  { %s22_s19 = sshll.u32 %s575_s18, 4  ;;  %p480_p0 = scmp.ne.s32.totalorder %s704_s1, %s479_s22  ;;  %s23_s19 = int_to_ptr.vmem [resolvable:$true] %s22_s19 }
   0x5   :  { %p483_p1 = scmp.lt.u32.totalorder %s479_s22, %s704_s1 }
   0x7   :  { %p485_p2 = pnand %p483_p1, %p480_p0 }
   0x9   :  { %488 = shalt.err (!%p485_p2)
}
   0xa   :  { %s489_s27 = scalar_lea.vmem %s23_s19, 256  ;;  %p494_p4 = scmp.lt.s32.totalorder %s23_s19, %s23_s19 }
   0xb   :  { %p490_p3 = scmp.ne.s32.totalorder %s23_s19, %s489_s27  ;;  %p495_p5 = scmp.lt.s32.totalorder %s489_s27, %s489_s27 }
   0xd   :  { %p496_p6 = por %p495_p5, %p494_p4 }
   0xf   :  { %p497_p7 = pnand %p496_p6, %p490_p3 }
  0x11   :  { %500 = shalt.err (!%p497_p7)
}
  0x12   :  { %s576_s28 = smov 128   ;;  %s577_s29 = smov 8  }
  0x13   :  { %28 = dma.hbm_to_vmem [thread:$0]  %s704_s1, 256, %s23_s19, [#allocation3], %s576_s28, %s576_s28, %s577_s29  }
  0x14   :  { %s578_s7 = smov [#allocation5]   ;;  %s501_s11 = scalar_lea.hbm %s705_s2, 256 }
  0x15   :  { %s34_s8 = sshll.u32 %s578_s7, 4  ;;  %p502_p8 = scmp.ne.s32.totalorder %s705_s2, %s501_s11  ;;  %s35_s8 = int_to_ptr.vmem [resolvable:$true] %s34_s8 }
  0x16   :  { %p505_p9 = scmp.lt.u32.totalorder %s501_s11, %s705_s2 }
  0x18   :  { %p507_p10 = pnand %p505_p9, %p502_p8 }
  0x1a   :  { %510 = shalt.err (!%p507_p10)
}
  0x1b   :  { %s511_s16 = scalar_lea.vmem %s35_s8, 256  ;;  %p516_p12 = scmp.lt.s32.totalorder %s35_s8, %s35_s8 }
  0x1c   :  { %p512_p11 = scmp.ne.s32.totalorder %s35_s8, %s511_s16  ;;  %p517_p13 = scmp.lt.s32.totalorder %s511_s16, %s511_s16 }
  0x1e   :  { %p518_p0 = por %p517_p13, %p516_p12 }
  0x20   :  { %p519_p1 = pnand %p518_p0, %p512_p11 }
  0x22   :  { %522 = shalt.err (!%p519_p1)
}
  0x23   :  { %40 = dma.hbm_to_vmem [thread:$0]  %s705_s2, 256, %s35_s8, [#allocation6], %s576_s28, %s576_s28, %s577_s29  }
  0x24   :  { %567 = dma.done.wait [#allocation3], 256  }
  0x25   :  { %568 = vsyncadd [#allocation3], 4294967040 }
  0x26   :  { %569 = dma.done.wait [#allocation6], 256  }
  0x27   :  { %570 = vsyncadd [#allocation6], 4294967040  ;;  %v579_v0 = vmov 0.0   ;;  %vm580_vm0 = vmmov 0   ;;  %vm61_vm1 = vcmask 261120   ;;  %v53_v1 = vld [vmem:[#allocation2] sm:$0xff] }
  0x28   :  { %443 = vmatprep.subr.mxu0 %v579_v0  ;;  %445 = vmatprep.mubr.msk.f32.mxu0 %vm580_vm0, %v579_v0  ;;  %v49_v2 = vld [vmem:[%s703_s0] sm:$0xff]  ;;  %v54_v3 = vld [vmem:[#allocation2 + $0x8] sm:$0xff]  ;;  %vm216_vm4 = vcmask 64512   ;;  %v55_v27 = vld [vmem:[#allocation5] sm:$0xff] }
  0x29   :  { %448 = vmatprep.subr.mxu1 %v579_v0  ;;  %450 = vmatprep.mubr.msk.f32.mxu1 %vm580_vm0, %v579_v0  ;;  %v51_v4 = vmul.f32 0.17677669, %v49_v2  ;;  %v50_v5 = vld [vmem:[%s703_s0 + $0x8] sm:$0xff]  ;;  %v57_v7 = vld [vmem:[%s706_s3] sm:$0xff]  ;;  %v56_v28 = vld [vmem:[#allocation5 + $0x8] sm:$0xff]  ;;  %s581_s0 = smov [#allocation8]  }
  0x2a   :  { %444 = vmatpush3.xpose.msk.msra.mxu0 %vm61_vm1, %v53_v1  ;;  %449 = vmatpush3.xpose.msk.msra.mxu1 %vm61_vm1, %v54_v3  ;;  %v52_v6 = vmul.f32 0.17677669, %v50_v5  ;;  %v58_v8 = vld [vmem:[%s706_s3 + $0x8] sm:$0xff]  ;;  %vm59_vm2 = vcmp.ne.s32.totalorder %v57_v7, 0  ;;  %s412_s3 = sshll.u32 %s581_s0, 4  ;;  %s413_s3 = int_to_ptr.vmem [resolvable:$true] %s412_s3 }
  0x2b   :  { %453 = vmatprep.subr.mxu0 %v579_v0  ;;  %458 = vmatprep.subr.mxu1 %v579_v0  ;;  %vm60_vm3 = vcmp.ne.s32.totalorder %v58_v8, 0  ;;  %s523_s25 = scalar_lea.vmem %s413_s3, 256  ;;  %p528_p3 = scmp.lt.s32.totalorder %s413_s3, %s413_s3 }
  0x2c   :  { %p524_p2 = scmp.ne.s32.totalorder %s413_s3, %s523_s25  ;;  %p529_p4 = scmp.lt.s32.totalorder %s523_s25, %s523_s25 }
  0x2d   :  { %446 = vmatmul.mubr.msk.f32.vlgmr.msra.gmra.mrb[0].mxu0 %vm61_vm1, %v51_v4  ;;  %451 = vmatmul.mubr.msk.f32.vlgmr.msra.gmra.mrb[0].mxu1 %vm61_vm1, %v52_v6 }
  0x2e   :  { %455 = vmatprep.mubr.msk.f32.mxu0 %vm580_vm0, %v579_v0  ;;  %460 = vmatprep.mubr.msk.f32.mxu1 %vm580_vm0, %v579_v0  ;;  %p530_p5 = por %p529_p4, %p528_p3 }
  0x2f   :  { %454 = vmatpush3.msra.mxu0 %v55_v27  ;;  %459 = vmatpush3.msra.mxu1 %v56_v28 }
  0x30   :  { %p531_p6 = pnand %p530_p5, %p524_p2 }
 0x100   :  { %v134_v9 = vpop.f32.mrb[0].mxu0  ;;  %v210_v10 = vpop.f32.mrb[0].mxu1 }
 0x101   :  { %v214_v11 = vsel %vm59_vm2, -1000.0, %v134_v9  ;;  %v447_v12 = vpop.f32.mrb[1].mxu0  ;;  %v215_v13 = vsel %vm60_vm3, -1000.0, %v210_v10  ;;  %v452_v14 = vpop.f32.mrb[1].mxu1 }
 0x102   :  { %v217_v15 = vsel %vm216_vm4, %v214_v11, -inf  ;;  %v220_v16 = vsel %vm216_vm4, %v215_v13, -inf }
 0x103   :  { %218 = vmax.xlane.f32.xlu0 %v217_v15 }
 0x107   :  { %221 = vmax.xlane.f32.xlu0 %v220_v16 }
 0x190   :  { %v219_v17 = vpop.xlane.xlu0 %218 }
 0x191   :  { %v223_v18 = vsub.f32 %v214_v11, %v219_v17 }
 0x193   :  { %v225_v19 = vmul.f32 1.442695, %v223_v18 }
 0x194   :  { %v222_v20 = vpop.xlane.xlu0 %221 }
 0x195   :  { %471 = vpow2.f32 %v225_v19  ;;  %v224_v21 = vsub.f32 %v215_v13, %v222_v20 }
 0x197   :  { %v227_v22 = vmul.f32 1.442695, %v224_v21 }
 0x199   :  { %473 = vpow2.f32 %v227_v22 }
 0x19f   :  { %v472_v23 = vpop.eup %471 }
 0x1a0   :  { %v229_v24 = vsel %vm216_vm4, %v472_v23, 0.0 }
 0x1a1   :  { %230 = vadd.xlane.f32.xlu1 %v229_v24 }
 0x1a3   :  { %v474_v25 = vpop.eup %473 }
 0x1a4   :  { %v232_v26 = vsel %vm216_vm4, %v474_v25, 0.0 }
 0x1a5   :  { %233 = vadd.xlane.f32.xlu1 %v232_v26 }
 0x22e   :  { %v231_v29 = vpop.xlane.xlu1 %230 }
 0x22f   :  { %475 = vrcp.f32 %v231_v29 }
 0x232   :  { %v234_v30 = vpop.xlane.xlu1 %233 }
 0x233   :  { %477 = vrcp.f32 %v234_v30 }
 0x239   :  { %v476_v31 = vpop.eup %475 }
 0x23a   :  { %v237_v32 = vmul.f32 %v476_v31, %v231_v29 }
 0x23c   :  { %v239_v33 = vsub.f32 2.0, %v237_v32 }
 0x23d   :  { %v478_v34 = vpop.eup %477 }
 0x23e   :  { %v241_v35 = vmul.f32 %v476_v31, %v239_v33  ;;  %v238_v36 = vmul.f32 %v478_v34, %v234_v30 }
 0x240   :  { %v243_v37 = vmul.f32 %v472_v23, %v241_v35  ;;  %v240_v38 = vsub.f32 2.0, %v238_v36 }
 0x242   :  { %245 = vst.msk [vmem:[#allocation8] sm:$0xff] %vm216_vm4, %v243_v37  ;;  %v242_v39 = vmul.f32 %v478_v34, %v240_v38  ;;  %456 = vmatmul.mubr.msk.f32.vlgmr.msra.gmra.mrb[2].mxu0 %vm216_vm4, %v243_v37 }
 0x244   :  { %v244_v40 = vmul.f32 %v474_v25, %v242_v39 }
 0x246   :  { %246 = vst.msk [vmem:[#allocation8 + $0x8] sm:$0xff] %vm216_vm4, %v244_v40  ;;  %461 = vmatmul.mubr.msk.f32.vlgmr.msra.gmra.mrb[2].mxu1 %vm216_vm4, %v244_v40 }
 0x247   :  { %534 = shalt.err (!%p531_p6)
}
 0x248   :  { %s535_s30 = scalar_lea.hbm %s708_s5, 256 }
 0x249   :  { %p536_p7 = scmp.ne.s32.totalorder %s708_s5, %s535_s30  ;;  %p539_p8 = scmp.lt.u32.totalorder %s535_s30, %s708_s5 }
 0x24b   :  { %p541_p9 = pnand %p539_p8, %p536_p7 }
 0x24d   :  { %544 = shalt.err (!%p541_p9)
}
 0x24e   :  { %418 = dma.vmem_to_hbm [thread:$0]  %s413_s3, 256, %s708_s5, [#allocation9], %s576_s28, %s576_s28, %s577_s29  }
 0x24f   :  { %s582_s12 = smov [#allocation7]  }
 0x250   :  { %s400_s13 = sshll.u32 %s582_s12, 4  ;;  %s401_s13 = int_to_ptr.vmem [resolvable:$true] %s400_s13 }
 0x251   :  { %s545_s14 = scalar_lea.vmem %s401_s13, 256  ;;  %p550_p11 = scmp.lt.s32.totalorder %s401_s13, %s401_s13 }
 0x252   :  { %p546_p10 = scmp.ne.s32.totalorder %s401_s13, %s545_s14  ;;  %p551_p12 = scmp.lt.s32.totalorder %s545_s14, %s545_s14 }
 0x254   :  { %p552_p13 = por %p551_p12, %p550_p11 }
 0x256   :  { %p553_p0 = pnand %p552_p13, %p546_p10 }
 0x315   :  { %v316_v41 = vpop.f32.mrb[2].mxu0 }
 0x316   :  { %393 = vst.msk [vmem:[#allocation7] sm:$0xff] %vm61_vm1, %v316_v41  ;;  %v457_v42 = vpop.f32.mrb[3].mxu0 }
 0x319   :  { %v389_v43 = vpop.f32.mrb[2].mxu1 }
 0x31a   :  { %394 = vst.msk [vmem:[#allocation7 + $0x8] sm:$0xff] %vm61_vm1, %v389_v43  ;;  %v462_v44 = vpop.f32.mrb[3].mxu1 }
 0x31b   :  { %556 = shalt.err (!%p553_p0)
}
 0x31c   :  { %s557_s16 = scalar_lea.hbm %s707_s4, 256 }
 0x31d   :  { %p558_p1 = scmp.ne.s32.totalorder %s707_s4, %s557_s16  ;;  %p561_p2 = scmp.lt.u32.totalorder %s557_s16, %s707_s4 }
 0x31f   :  { %p563_p3 = pnand %p561_p2, %p558_p1 }
 0x321   :  { %566 = shalt.err (!%p563_p3)
}
 0x322   :  { %406 = dma.vmem_to_hbm [thread:$0]  %s401_s13, 256, %s707_s4, [#allocation4], %s576_s28, %s576_s28, %s577_s29  }
 0x323   :  { %571 = dma.done.wait [#allocation4], 256  }
 0x324   :  { %572 = vsyncadd [#allocation4], 4294967040 }
 0x325   :  { %573 = dma.done.wait [#allocation9], 256  }
 0x326   :  { %574 = vsyncadd [#allocation9], 4294967040 }
 0x327   :  { %425 = vsyncpa [#allocation3], 1 }
 0x328   :  { %426 = vsyncpa [#allocation6], 1 }
 0x329   :  { %427 = vsyncpa [#allocation4], 1 }
 0x32a   :  { %428 = vsyncpa [#allocation9], 1 }

</bundles_post_ra>
